<compile_context>
chip_gen: v5e
topology: v5e:2x2
jax: 0.10.0
libtpu: 0.0.40
codegen_flags: <defaults>
</compile_context>

<pallas_src>
import jax
import jax.numpy as jnp
from jax.experimental import pallas as pl
from jax.experimental.pallas import tpu as pltpu


def _round_up(x, m):
    return ((x + m - 1) // m) * m


def mlp_reward_kernel(xt_ref, w1_ref, b1_ref, w2_ref, b2_ref, w3_ref, b3_ref, o_ref):
    # ---- Layer 1: [64, n_in] @ [n_in, TB] -> [64, TB]  (MXU, bf16 ops, f32 acc, N=TB) ----
    h1 = jnp.dot(w1_ref[...], xt_ref[...], preferred_element_type=jnp.float32) + b1_ref[...]
    h1 = jnp.maximum(h1, 0.01 * h1)                       # LeakyReLU (VPU, 2 ops)

    # ---- Layer 2: [64, 64] @ [64, TB] -> [64, TB]  (MXU, bf16 ops, f32 acc) ----
    h2 = jnp.dot(w2_ref[...], h1.astype(jnp.bfloat16),
                 preferred_element_type=jnp.float32) + b2_ref[...]
    h2 = jnp.maximum(h2, 0.01 * h2)                       # LeakyReLU (VPU, 2 ops)

    # ---- Layer 3 (out width 1): f32 VPU multiply + sublane reduction (XLU has slack) ----
    # Result is a lane-dense (1, TB) row: dense EUP sigmoid + unmasked vst stores.
    h3 = jnp.sum(h2 * w3_ref[...], axis=0, keepdims=True) + b3_ref[...]

    o_ref[...] = jax.nn.sigmoid(h3).astype(o_ref.dtype)


def mlp_reward_net(x, params, *, tb=8192):
    """x: [B, n_inputs] float32 -> [B, 1] float32 (forward of the PyTorch MlpRewardNet)."""
    w1, b1, w2, b2, w3, b3 = params          # PyTorch layout: w [out, in], b [out]
    B, n_in = x.shape
    hid = w1.shape[0]

    # Balanced tiling: pick the tile count first, then a 128-multiple tile size.
    # Force an even tile count >= 2 for larger batches so v7x can shard the "parallel"
    # batch axis across both TensorCores (costs one extra ~0.35us step on v5e/v6e).
    nb = pl.cdiv(B, tb)
    if B > 1024:
        nb = max(nb, 2)
        if nb % 2:
            nb += 1
    tb_eff = _round_up(pl.cdiv(B, nb), 128)
    pad_b = nb * tb_eff

    # One-time wrapper-side layout / casting work (XLA fuses pad + cast + transpose):
    #   x^T [n_in, pad_b] bf16, bf16 weights, f32 column biases, f32 layer-3 column.
    xt = jnp.pad(x, ((0, pad_b - B), (0, 0))).astype(jnp.bfloat16).T
    w1_bf = w1.astype(jnp.bfloat16)                     # [64, n_in]
    w2_bf = w2.astype(jnp.bfloat16)                     # [64, 64]
    b1_c = b1.reshape(hid, 1).astype(jnp.float32)       # [64, 1]
    b2_c = b2.reshape(hid, 1).astype(jnp.float32)       # [64, 1]
    w3_c = w3.reshape(hid, 1).astype(jnp.float32)       # [64, 1]
    b3_c = b3.reshape(1, 1).astype(jnp.float32)         # [1, 1]

    cost = pl.CostEstimate(
        flops=2 * pad_b * (n_in * hid + hid * hid + hid),
        transcendentals=pad_b,                                           # sigmoid
        bytes_accessed=pad_b * (2 * n_in + 4)                            # x^T bf16 + out f32
                       + 2 * hid * (n_in + hid) + 4 * (3 * hid + 1),     # weights + biases
    )

    out = pl.pallas_call(
        mlp_reward_kernel,
        out_shape=jax.ShapeDtypeStruct((1, pad_b), jnp.float32),
        grid=(nb,),
        in_specs=[
            pl.BlockSpec((n_in, tb_eff), lambda i: (0, i)),   # x^T batch tiles (double-buffered)
            pl.BlockSpec(w1_bf.shape, lambda i: (0, 0)),      # weights/biases: constant block
            pl.BlockSpec(b1_c.shape, lambda i: (0, 0)),       #   index => VMEM-resident
            pl.BlockSpec(w2_bf.shape, lambda i: (0, 0)),
            pl.BlockSpec(b2_c.shape, lambda i: (0, 0)),
            pl.BlockSpec(w3_c.shape, lambda i: (0, 0)),
            pl.BlockSpec(b3_c.shape, lambda i: (0, 0)),
        ],
        out_specs=pl.BlockSpec((1, tb_eff), lambda i: (0, i)),  # lane-dense output tile
        compiler_params=pltpu.CompilerParams(
            dimension_semantics=("parallel",),                  # shard batch tiles on v7x's 2 TCs
        ),
        cost_estimate=cost,
    )(xt, w1_bf, b1_c, w2_bf, b2_c, w3_c, b3_c)

    return out[0, :B].reshape(B, 1)


def init_params(key, n_inputs):
    """Deterministic init mimicking PyTorch nn.Linear default (uniform +-1/sqrt(fan_in)).
    Stored in PyTorch layout: weights [out, in], biases [out]."""
    dims = [(n_inputs, 64), (64, 64), (64, 1)]
    params = []
    for fan_in, fan_out in dims:
        key, kw, kb = jax.random.split(key, 3)
        bound = 1.0 / jnp.sqrt(fan_in)
        w = jax.random.uniform(kw, (fan_out, fan_in), jnp.float32, -bound, bound)
        b = jax.random.uniform(kb, (fan_out,), jnp.float32, -bound, bound)
        params += [w, b]
    return tuple(params)


def reference_forward(x, params):
    """Pure-JAX f32 reference matching the PyTorch module semantics."""
    w1, b1, w2, b2, w3, b3 = params
    h = x @ w1.T + b1
    h = jnp.where(h > 0, h, 0.01 * h)
    h = h @ w2.T + b2
    h = jnp.where(h > 0, h, 0.01 * h)
    h = h @ w3.T + b3
    return jax.nn.sigmoid(h)


if __name__ == "__main__":
    key = jax.random.PRNGKey(0)
    k_x, k_p = jax.random.split(key)

    batch, n_inputs = 8, 32
    x = jax.random.normal(k_x, (batch, n_inputs), jnp.float32)
    params = init_params(k_p, n_inputs)

    out = mlp_reward_net(x, params)
    out = jax.block_until_ready(out)

    ref = reference_forward(x, params)
    assert out.shape == (batch, 1), out.shape
    # Tolerance relaxed vs. the f32 reference: layers 1-2 use bf16 MXU operands
    # (f32 accumulation); the layer-3 reduction and sigmoid stay in f32.
    assert jnp.allclose(out, ref, atol=2e-2, rtol=2e-2), (out, ref)

    print("KERNEL_OK")
</pallas_src>

<mosaic_0001>
module attributes {stable_mosaic.version = 11 : i64} {
  func.func @mlp_reward_kernel(%arg0: i32, %arg1: memref<32x128xbf16, #tpu.memory_space<vmem>>, %arg2: memref<64x32xbf16, #tpu.memory_space<vmem>>, %arg3: memref<64x1xf32, #tpu.memory_space<vmem>>, %arg4: memref<64x64xbf16, #tpu.memory_space<vmem>>, %arg5: memref<64x1xf32, #tpu.memory_space<vmem>>, %arg6: memref<64x1xf32, #tpu.memory_space<vmem>>, %arg7: memref<1x1xf32, #tpu.memory_space<vmem>>, %arg8: memref<1x128xf32, #tpu.memory_space<vmem>>) attributes {dimension_semantics = [#tpu.dimension_semantics<parallel>], iteration_bounds = array<i64: 1>, scalar_prefetch = 0 : i64, scratch_operands = 0 : i64, tpu.core_type = #tpu.core_type<tc>, window_params = [{transform_indices = @transform_0, window_bounds = array<i64: 32, 128>}, {pipeline_mode = #tpu.pipeline_mode<synchronous>, transform_indices = @transform_1, window_bounds = array<i64: 64, 32>}, {pipeline_mode = #tpu.pipeline_mode<synchronous>, transform_indices = @transform_2, window_bounds = array<i64: 64, 1>}, {pipeline_mode = #tpu.pipeline_mode<synchronous>, transform_indices = @transform_3, window_bounds = array<i64: 64, 64>}, {pipeline_mode = #tpu.pipeline_mode<synchronous>, transform_indices = @transform_4, window_bounds = array<i64: 64, 1>}, {pipeline_mode = #tpu.pipeline_mode<synchronous>, transform_indices = @transform_5, window_bounds = array<i64: 64, 1>}, {pipeline_mode = #tpu.pipeline_mode<synchronous>, transform_indices = @transform_6, window_bounds = array<i64: 1, 1>}, {transform_indices = @transform_7, window_bounds = array<i64: 1, 128>}]} {
    %c0 = arith.constant 0 : index
    %c0_0 = arith.constant 0 : index
    %0 = vector.load %arg2[%c0, %c0_0] : memref<64x32xbf16, #tpu.memory_space<vmem>>, vector<64x32xbf16>
    %c0_1 = arith.constant 0 : index
    %c0_2 = arith.constant 0 : index
    %1 = vector.load %arg1[%c0_1, %c0_2] : memref<32x128xbf16, #tpu.memory_space<vmem>>, vector<32x128xbf16>
    %cst = arith.constant dense<0.000000e+00> : vector<64x128xf32>
    %2 = tpu.matmul %0, %1, %cst {dimension_numbers = #tpu.dot_dimension_numbers<[1], [0], [0], [1], [0, 0, 1, 1], [], []>} : vector<64x32xbf16>, vector<32x128xbf16>, vector<64x128xf32> -> vector<64x128xf32>
    %c0_3 = arith.constant 0 : index
    %c0_4 = arith.constant 0 : index
    %3 = vector.load %arg3[%c0_3, %c0_4] : memref<64x1xf32, #tpu.memory_space<vmem>>, vector<64x1xf32>
    %4 = vector.broadcast %3 : vector<64x1xf32> to vector<64x128xf32>
    %5 = arith.addf %2, %4 : vector<64x128xf32>
    %cst_5 = arith.constant 0.00999999977 : f32
    %6 = vector.broadcast %cst_5 : f32 to vector<64x128xf32>
    %7 = arith.mulf %6, %5 : vector<64x128xf32>
    %8 = arith.maximumf %5, %7 : vector<64x128xf32>
    %c0_6 = arith.constant 0 : index
    %c0_7 = arith.constant 0 : index
    %9 = vector.load %arg4[%c0_6, %c0_7] : memref<64x64xbf16, #tpu.memory_space<vmem>>, vector<64x64xbf16>
    %10 = arith.truncf %8 : vector<64x128xf32> to vector<64x128xbf16>
    %cst_8 = arith.constant dense<0.000000e+00> : vector<64x128xf32>
    %11 = tpu.matmul %9, %10, %cst_8 {dimension_numbers = #tpu.dot_dimension_numbers<[1], [0], [0], [1], [0, 0, 1, 1], [], []>} : vector<64x64xbf16>, vector<64x128xbf16>, vector<64x128xf32> -> vector<64x128xf32>
    %c0_9 = arith.constant 0 : index
    %c0_10 = arith.constant 0 : index
    %12 = vector.load %arg5[%c0_9, %c0_10] : memref<64x1xf32, #tpu.memory_space<vmem>>, vector<64x1xf32>
    %13 = vector.broadcast %12 : vector<64x1xf32> to vector<64x128xf32>
    %14 = arith.addf %11, %13 : vector<64x128xf32>
    %cst_11 = arith.constant 0.00999999977 : f32
    %15 = vector.broadcast %cst_11 : f32 to vector<64x128xf32>
    %16 = arith.mulf %15, %14 : vector<64x128xf32>
    %17 = arith.maximumf %14, %16 : vector<64x128xf32>
    %c0_12 = arith.constant 0 : index
    %c0_13 = arith.constant 0 : index
    %18 = vector.load %arg6[%c0_12, %c0_13] : memref<64x1xf32, #tpu.memory_space<vmem>>, vector<64x1xf32>
    %19 = vector.broadcast %18 : vector<64x1xf32> to vector<64x128xf32>
    %20 = arith.mulf %17, %19 : vector<64x128xf32>
    %cst_14 = arith.constant dense<0.000000e+00> : vector<128xf32>
    %21 = vector.multi_reduction <add>, %20, %cst_14 [0] : vector<64x128xf32> to vector<128xf32>
    %22 = vector.shape_cast %21 : vector<128xf32> to vector<1x128xf32>
    %c0_15 = arith.constant 0 : index
    %c0_16 = arith.constant 0 : index
    %23 = vector.load %arg7[%c0_15, %c0_16] : memref<1x1xf32, #tpu.memory_space<vmem>>, vector<1x1xf32>
    %24 = vector.broadcast %23 : vector<1x1xf32> to vector<1x128xf32>
    %25 = arith.addf %22, %24 : vector<1x128xf32>
    %26 = arith.negf %25 : vector<1x128xf32>
    %27 = math.exp %26 : vector<1x128xf32>
    %cst_17 = arith.constant 1.000000e+00 : f32
    %28 = vector.broadcast %cst_17 : f32 to vector<1x128xf32>
    %29 = arith.addf %28, %27 : vector<1x128xf32>
    %30 = arith.divf %28, %29 : vector<1x128xf32>
    %c0_18 = arith.constant 0 : index
    %c0_19 = arith.constant 0 : index
    %31 = vector.load %arg8[%c0_18, %c0_19] : memref<1x128xf32, #tpu.memory_space<vmem>>, vector<1x128xf32>
    tpu.vector_store %arg8[%c0_18, %c0_19], %30 {strides = array<i32>} : memref<1x128xf32, #tpu.memory_space<vmem>>, vector<1x128xf32>,
    return
  }
  func.func @transform_0(%arg0: i32) -> (i32, i32) {
    %c0_i32 = arith.constant 0 : i32
    %c0_i32_0 = arith.constant 0 : i32
    return %c0_i32, %arg0 : i32, i32
  }
  func.func @transform_1(%arg0: i32) -> (i32, i32) {
    %c0_i32 = arith.constant 0 : i32
    %c0_i32_0 = arith.constant 0 : i32
    %c0_i32_1 = arith.constant 0 : i32
    return %c0_i32, %c0_i32_0 : i32, i32
  }
  func.func @transform_2(%arg0: i32) -> (i32, i32) {
    %c0_i32 = arith.constant 0 : i32
    %c0_i32_0 = arith.constant 0 : i32
    %c0_i32_1 = arith.constant 0 : i32
    return %c0_i32, %c0_i32_0 : i32, i32
  }
  func.func @transform_3(%arg0: i32) -> (i32, i32) {
    %c0_i32 = arith.constant 0 : i32
    %c0_i32_0 = arith.constant 0 : i32
    %c0_i32_1 = arith.constant 0 : i32
    return %c0_i32, %c0_i32_0 : i32, i32
  }
  func.func @transform_4(%arg0: i32) -> (i32, i32) {
    %c0_i32 = arith.constant 0 : i32
    %c0_i32_0 = arith.constant 0 : i32
    %c0_i32_1 = arith.constant 0 : i32
    return %c0_i32, %c0_i32_0 : i32, i32
  }
  func.func @transform_5(%arg0: i32) -> (i32, i32) {
    %c0_i32 = arith.constant 0 : i32
    %c0_i32_0 = arith.constant 0 : i32
    %c0_i32_1 = arith.constant 0 : i32
    return %c0_i32, %c0_i32_0 : i32, i32
  }
  func.func @transform_6(%arg0: i32) -> (i32, i32) {
    %c0_i32 = arith.constant 0 : i32
    %c0_i32_0 = arith.constant 0 : i32
    %c0_i32_1 = arith.constant 0 : i32
    return %c0_i32, %c0_i32_0 : i32, i32
  }
  func.func @transform_7(%arg0: i32) -> (i32, i32) {
    %c0_i32 = arith.constant 0 : i32
    %c0_i32_0 = arith.constant 0 : i32
    return %c0_i32, %arg0 : i32, i32
  }
}

</mosaic_0001>

<bundles_post_ra>
// kernel: tpu_custom_call.1
= control target key start
LH: loop header
LB: loop body
LE: loop exit
PB: predicated region body
PF: predicated region fallthrough
CT: control target
= control target key end

     0   :  { %s685_s0 = inlined_call_operand.vmem [shape: bf16[32,128], index: 0, kind: input, shape index: {}]   ;;  %s686_s1 = inlined_call_operand.vmem [shape: bf16[64,32], index: 1, kind: input, shape index: {}]   ;;  %s687_s2 = inlined_call_operand.vmem [shape: f32[64,1], index: 2, kind: input, shape index: {}]   ;;  %s688_s3 = inlined_call_operand.vmem [shape: bf16[64,64], index: 3, kind: input, shape index: {}]   ;;  %s689_s4 = inlined_call_operand.vmem [shape: f32[64,1], index: 4, kind: input, shape index: {}]   ;;  %s690_s5 = inlined_call_operand.vmem [shape: f32[64,1], index: 5, kind: input, shape index: {}]   ;;  %s691_s6 = inlined_call_operand.<no memory space> [shape: f32[1,1], index: 6, kind: input, shape index: {}]   ;;  %s692_s7 = inlined_call_operand.hbm [shape: f32[1,128], index: 7, kind: output, shape index: {}]  }
   0x1   :  { %v12_v0 = vstv %s691_s6 }
   0x2   :  { %13 = vst [vmem:[#allocation2] sm:$0x1] %v12_v0 }
   0x3   :  { %v48_v1 = vld [vmem:[%s687_s2 + $0x30] sm:$0xff]  ;;  %v485_v2 = vld [vmem:[%s685_s0 + $0x8] sm:$0xff]  ;;  %v46_v3 = vld [vmem:[%s687_s2 + $0x20] sm:$0xff]  ;;  %v531_v4 = vmov 0  }
   0x4   :  { %498 = vset.pattern.permute.xlu0 %v531_v4  ;;  %499 = vset.pattern.permute.xlu1 %v531_v4  ;;  %v484_v5 = vld [vmem:[%s685_s0] sm:$0xff]  ;;  %v44_v6 = vld [vmem:[%s687_s2 + $0x10] sm:$0xff]  ;;  %v481_v7 = vld [vmem:[%s686_s1 + $0x8] sm:$0xff] }
   0x5   :  { %82 = vperm.xlu0 %498, %v48_v1   ;;  %490 = vmatpush.bf16.msra.mxu3 %v485_v2 }
   0x6   :  { %72 = vperm.xlu1 %499, %v46_v3   ;;  %141 = vmatpush.bf16.msra.mxu0 %v485_v2 }
   0x7   :  { %500 = vset.pattern.permute.xlu2 %v531_v4 }
   0x8   :  { %62 = vperm.xlu2 %500, %v44_v6  }
   0x9   :  { %14 = vsyncpa [#allocation4], 0  ;;  %491 = vmatpush.bf16.msra.mxu3 %v484_v5  ;;  %vm122_vm0 = vcmask 261120   ;;  %v480_v8 = vld [vmem:[%s686_s1] sm:$0xff]  ;;  %v49_v9 = vld [vmem:[%s687_s2 + $0x38] sm:$0xff]  ;;  %vm260_vm1 = vcmask 523264  }
   0xa   :  { %142 = vmatpush.bf16.msra.mxu0 %v484_v5  ;;  %v47_v10 = vld [vmem:[%s687_s2 + $0x28] sm:$0xff]  ;;  %v45_v11 = vld [vmem:[%s687_s2 + $0x18] sm:$0xff]  ;;  %v42_v12 = vld [vmem:[%s687_s2] sm:$0xff]  ;;  %s422_s17 = sshll.u32 %s692_s7, 4  ;;  %s423_s17 = int_to_ptr.hbm [resolvable:$true] %s422_s17 }
   0xb   :  { %v43_v13 = vld [vmem:[%s687_s2 + $0x8] sm:$0xff]  ;;  %v192_v14 = vld [vmem:[%s689_s4] sm:$0xff]  ;;  %v482_v15 = vld [vmem:[%s686_s1 + $0x10] sm:$0xff] }
   0xc   :  { %456 = vmatmul.msk.bf16.vlgmr.msra.gmra.mxu3 %vm122_vm0, %v481_v7  ;;  %v193_v16 = vld [vmem:[%s689_s4 + $0x8] sm:$0xff]  ;;  %v194_v17 = vld [vmem:[%s689_s4 + $0x10] sm:$0xff]  ;;  %v195_v18 = vld [vmem:[%s689_s4 + $0x18] sm:$0xff] }
   0xd   :  { %87 = vperm.xlu0 %498, %v49_v9   ;;  %455 = vmatmul.msk.bf16.vlgmr.msra.gmra.mxu0 %vm122_vm0, %v480_v8  ;;  %v196_v19 = vld [vmem:[%s689_s4 + $0x20] sm:$0xff]  ;;  %v319_v21 = vld [vmem:[%s690_s5 + $0x8] sm:$0xff]  ;;  %v483_v22 = vld [vmem:[%s686_s1 + $0x18] sm:$0xff] }
   0xe   :  { %77 = vperm.xlu1 %499, %v47_v10   ;;  %v318_v20 = vld [vmem:[%s690_s5] sm:$0xff]  ;;  %v197_v23 = vld [vmem:[%s689_s4 + $0x28] sm:$0xff]  ;;  %v320_v24 = vld [vmem:[%s690_s5 + $0x10] sm:$0xff] }
   0xf   :  { %v198_v25 = vld [vmem:[%s689_s4 + $0x30] sm:$0xff]  ;;  %v321_v26 = vld [vmem:[%s690_s5 + $0x18] sm:$0xff]  ;;  %v322_v28 = vld [vmem:[%s690_s5 + $0x20] sm:$0xff] }
  0x10   :  { %67 = vperm.xlu2 %500, %v45_v11   ;;  %v199_v27 = vld [vmem:[%s689_s4 + $0x38] sm:$0xff]  ;;  %v323_v29 = vld [vmem:[%s690_s5 + $0x28] sm:$0xff]  ;;  %v324_v30 = vld [vmem:[%s690_s5 + $0x30] sm:$0xff] }
  0x11   :  { %v325_v31 = vld [vmem:[%s690_s5 + $0x38] sm:$0xff]  ;;  %v387_v32 = vld [vmem:[#allocation2] sm:$0x1] }
  0x15   :  { %52 = vperm.xlu0 %498, %v42_v12  }
  0x16   :  { %57 = vperm.xlu1 %499, %v43_v13   ;;  %v486_v13 = vld [vmem:[%s688_s3] sm:$0xff] }
  0x18   :  { %202 = vperm.xlu2 %500, %v192_v14   ;;  %v488_v14 = vld [vmem:[%s688_s3 + $0x10] sm:$0xff] }
  0x1c   :  { %457 = vmatmul.msk.bf16.gmra.mxu3 %vm122_vm0, %v482_v15  ;;  %v487_v15 = vld [vmem:[%s688_s3 + $0x8] sm:$0xff] }
  0x1d   :  { %207 = vperm.xlu0 %498, %v193_v16   ;;  %v489_v16 = vld [vmem:[%s688_s3 + $0x18] sm:$0xff]  ;;  %s532_s3 = smov [#allocation3]  }
  0x1e   :  { %212 = vperm.xlu1 %499, %v194_v17   ;;  %s420_s15 = sshll.u32 %s532_s3, 4  ;;  %s421_s15 = int_to_ptr.vmem [resolvable:$true] %s420_s15 }
  0x20   :  { %217 = vperm.xlu2 %500, %v195_v18  }
  0x25   :  { %222 = vperm.xlu0 %498, %v196_v19  }
  0x26   :  { %328 = vperm.xlu1 %499, %v318_v20  }
  0x28   :  { %333 = vperm.xlu2 %500, %v319_v21  }
  0x2c   :  { %458 = vmatmul.msk.bf16.gmra.mxu3 %vm122_vm0, %v483_v22 }
  0x2d   :  { %227 = vperm.xlu0 %498, %v197_v23  }
  0x2e   :  { %338 = vperm.xlu1 %499, %v320_v24  }
  0x30   :  { %232 = vperm.xlu2 %500, %v198_v25  }
  0x35   :  { %343 = vperm.xlu0 %498, %v321_v26  }
  0x36   :  { %237 = vperm.xlu1 %499, %v199_v27  }
  0x38   :  { %348 = vperm.xlu2 %500, %v322_v28  }
  0x3d   :  { %353 = vperm.xlu0 %498, %v323_v29  }
  0x3e   :  { %358 = vperm.xlu1 %499, %v324_v30  }
  0x40   :  { %363 = vperm.xlu2 %500, %v325_v31  }
  0x45   :  { %390 = vperm.xlu0 %498, %v387_v32  }
  0x62   :  { %v63_v39 = vpop.permute.xlu2 %62 }
  0x6a   :  { %v68_v50 = vpop.permute.xlu2 %67 }
  0x72   :  { %v203_v17 = vpop.permute.xlu2 %202 }
  0x77   :  { %v83_v37 = vpop.permute.xlu0 %82 }
  0x78   :  { %v73_v38 = vpop.permute.xlu1 %72 }
  0x7a   :  { %v218_v20 = vpop.permute.xlu2 %217 }
  0x7f   :  { %v88_v42 = vpop.permute.xlu0 %87 }
  0x80   :  { %v78_v43 = vpop.permute.xlu1 %77 }
  0x82   :  { %v334_v25 = vpop.permute.xlu2 %333 }
  0x87   :  { %v53_v55 = vpop.permute.xlu0 %52 }
  0x88   :  { %v58_v60 = vpop.permute.xlu1 %57 }
  0x8a   :  { %v144_v41 = vpop.f32.mrf.mxu0 }
  0x8b   :  { %v145_v61 = vadd.f32 %v144_v41, %v53_v55 }
  0x8d   :  { %v164_v5 = vmul.f32 0.01, %v145_v61 }
  0x8f   :  { %v149_v33 = vpop.f32.mrf.mxu3  ;;  %v172_v9 = vmax.f32 %v145_v61, %v164_v5  ;;  %v208_v18 = vpop.permute.xlu0 %207 }
  0x90   :  { %v150_v56 = vadd.f32 %v149_v33, %v63_v39  ;;  %v213_v19 = vpop.permute.xlu1 %212 }
  0x92   :  { %v146_v54 = vpop.f32.mrf.mxu0  ;;  %v166_v2 = vmul.f32 0.01, %v150_v56 }
  0x93   :  { %v147_v0 = vadd.f32 %v146_v54, %v58_v60 }
  0x94   :  { %v174_v8 = vmax.f32 %v150_v56, %v166_v2 }
  0x95   :  { %v165_v6 = vmul.f32 0.01, %v147_v0 }
  0x97   :  { %v151_v34 = vpop.f32.mrf.mxu3  ;;  %v173_v10 = vmax.f32 %v147_v0, %v165_v6  ;;  %v223_v22 = vpop.permute.xlu0 %222 }
  0x98   :  { %v152_v51 = vadd.f32 %v151_v34, %v68_v50  ;;  %v329_v23 = vpop.permute.xlu1 %328 }
  0x99   :  { %v188_v12 = vpack.c.bf16 %v173_v10, %v172_v9 }
  0x9a   :  { %v167_v62 = vmul.f32 0.01, %v152_v51 }
  0x9c   :  { %v175_v4 = vmax.f32 %v152_v51, %v167_v62 }
  0x9e   :  { %v189_v11 = vpack.c.bf16 %v175_v4, %v174_v8 }
  0x9f   :  { %v154_v35 = vpop.f32.mrf.mxu3  ;;  %v228_v28 = vpop.permute.xlu0 %227 }
  0xa0   :  { %v155_v47 = vadd.f32 %v154_v35, %v73_v38  ;;  %v339_v31 = vpop.permute.xlu1 %338  ;;  %v233_v35 = vpop.permute.xlu2 %232 }
  0xa2   :  { %v168_v57 = vmul.f32 0.01, %v155_v47 }
  0xa4   :  { %v176_v3 = vmax.f32 %v155_v47, %v168_v57 }
  0xa7   :  { %v156_v36 = vpop.f32.mrf.mxu3 }
  0xa8   :  { %v157_v45 = vadd.f32 %v156_v36, %v78_v43  ;;  %v238_v50 = vpop.permute.xlu1 %237  ;;  %v349_v55 = vpop.permute.xlu2 %348 }
  0xaa   :  { %v169_v52 = vmul.f32 0.01, %v157_v45 }
  0xac   :  { %v177_v63 = vmax.f32 %v157_v45, %v169_v52 }
  0xae   :  { %v190_v7 = vpack.c.bf16 %v177_v63, %v176_v3 }
  0xaf   :  { %v159_v40 = vpop.f32.mrf.mxu3 }
  0xb0   :  { %v160_v44 = vadd.f32 %v159_v40, %v83_v37  ;;  %v359_v9 = vpop.permute.xlu1 %358 }
  0xb2   :  { %v170_v48 = vmul.f32 0.01, %v160_v44 }
  0xb4   :  { %v178_v58 = vmax.f32 %v160_v44, %v170_v48  ;;  %v344_v44 = vpop.permute.xlu0 %343 }
  0xb7   :  { %v161_v46 = vpop.f32.mrf.mxu3 }
  0xb8   :  { %v162_v49 = vadd.f32 %v161_v46, %v88_v42 }
  0xba   :  { %v171_v53 = vmul.f32 0.01, %v162_v49 }
  0xbc   :  { %v179_v59 = vmax.f32 %v162_v49, %v171_v53  ;;  %v354_v5 = vpop.permute.xlu0 %353 }
  0xbe   :  { %v191_v1 = vpack.c.bf16 %v179_v59, %v178_v58 }
  0xc0   :  { %277 = vmatpush.bf16.msra.mxu1 %v191_v1  ;;  %492 = vmatpush.bf16.msra.mxu2 %v191_v1 }
  0xc4   :  { %278 = vmatpush.bf16.msra.mxu1 %v190_v7  ;;  %493 = vmatpush.bf16.msra.mxu2 %v190_v7 }
  0xc8   :  { %279 = vmatpush.bf16.msra.mxu1 %v189_v11  ;;  %494 = vmatpush.bf16.msra.mxu2 %v189_v11 }
  0xcc   :  { %280 = vmatpush.bf16.msra.mxu1 %v188_v12  ;;  %495 = vmatpush.bf16.msra.mxu2 %v188_v12  ;;  %v364_v12 = vpop.permute.xlu2 %363 }
  0xcf   :  { %475 = vmatmul.msk.bf16.vlgmr.msra.gmra.mxu1 %vm260_vm1, %v486_v13  ;;  %477 = vmatmul.msk.bf16.vlgmr.msra.gmra.mxu2 %vm260_vm1, %v488_v14 }
  0xdf   :  { %476 = vmatmul.msk.bf16.gmra.mxu1 %vm260_vm1, %v487_v15  ;;  %478 = vmatmul.msk.bf16.gmra.mxu2 %vm260_vm1, %v489_v16 }
 0x14c   :  { %v282_v21 = vpop.f32.mrf.mxu1 }
 0x14d   :  { %v283_v30 = vadd.f32 %v282_v21, %v203_v17 }
 0x14f   :  { %v302_v36 = vmul.f32 0.01, %v283_v30 }
 0x151   :  { %v310_v41 = vmax.f32 %v283_v30, %v302_v36 }
 0x152   :  { %v292_v24 = vpop.f32.mrf.mxu2 }
 0x153   :  { %v293_v38 = vadd.f32 %v292_v24, %v223_v22  ;;  %v366_v51 = vmul.f32 %v329_v23, %v310_v41 }
 0x154   :  { %v284_v26 = vpop.f32.mrf.mxu1 }
 0x155   :  { %v285_v27 = vadd.f32 %v284_v26, %v208_v18  ;;  %v306_v46 = vmul.f32 0.01, %v293_v38 }
 0x157   :  { %v303_v33 = vmul.f32 0.01, %v285_v27  ;;  %v314_v56 = vmax.f32 %v293_v38, %v306_v46 }
 0x159   :  { %v311_v39 = vmax.f32 %v285_v27, %v303_v33  ;;  %v370_v1 = vmul.f32 %v349_v55, %v314_v56 }
 0x15a   :  { %v294_v29 = vpop.f32.mrf.mxu2 }
 0x15b   :  { %v295_v42 = vadd.f32 %v294_v29, %v228_v28  ;;  %v367_v47 = vmul.f32 %v334_v25, %v311_v39 }
 0x15c   :  { %v287_v32 = vpop.f32.mrf.mxu1 }
 0x15d   :  { %v288_v34 = vadd.f32 %v287_v32, %v213_v19  ;;  %v307_v52 = vmul.f32 0.01, %v295_v42  ;;  %v374_v57 = vadd.f32 %v367_v47, %v366_v51 }
 0x15f   :  { %v304_v37 = vmul.f32 0.01, %v288_v34  ;;  %v315_v61 = vmax.f32 %v295_v42, %v307_v52 }
 0x161   :  { %v312_v43 = vmax.f32 %v288_v34, %v304_v37  ;;  %v371_v6 = vmul.f32 %v354_v5, %v315_v61 }
 0x162   :  { %v297_v40 = vpop.f32.mrf.mxu2 }
 0x163   :  { %v298_v48 = vadd.f32 %v297_v40, %v233_v35  ;;  %v368_v53 = vmul.f32 %v339_v31, %v312_v43 }
 0x164   :  { %v289_v45 = vpop.f32.mrf.mxu1 }
 0x165   :  { %v290_v49 = vadd.f32 %v289_v45, %v218_v20  ;;  %v308_v58 = vmul.f32 0.01, %v298_v48  ;;  %v375_v62 = vadd.f32 %v374_v57, %v368_v53  ;;  %v391_v20 = vpop.permute.xlu0 %390 }
 0x166   :  { %v393_v22 = vperm.slane %v391_v20, 0 }
 0x167   :  { %v305_v54 = vmul.f32 0.01, %v290_v49  ;;  %v316_v2 = vmax.f32 %v298_v48, %v308_v58 }
 0x169   :  { %v313_v59 = vmax.f32 %v290_v49, %v305_v54  ;;  %v372_v10 = vmul.f32 %v359_v9, %v316_v2 }
 0x16a   :  { %v299_v60 = vpop.f32.mrf.mxu2 }
 0x16b   :  { %v369_v63 = vmul.f32 %v344_v44, %v313_v59  ;;  %v300_v0 = vadd.f32 %v299_v60, %v238_v50 }
 0x16d   :  { %v376_v3 = vadd.f32 %v375_v62, %v369_v63  ;;  %v309_v4 = vmul.f32 0.01, %v300_v0 }
 0x16f   :  { %v377_v7 = vadd.f32 %v376_v3, %v370_v1  ;;  %v317_v8 = vmax.f32 %v300_v0, %v309_v4 }
 0x171   :  { %v378_v11 = vadd.f32 %v377_v7, %v371_v6  ;;  %v373_v13 = vmul.f32 %v364_v12, %v317_v8 }
 0x173   :  { %v379_v14 = vadd.f32 %v378_v11, %v372_v10 }
 0x175   :  { %v380_v15 = vadd.f32 %v379_v14, %v373_v13 }
 0x177   :  { %v381_v16 = vrot.slane %v380_v15, 4 }
 0x179   :  { %v382_v17 = vadd.f32 %v381_v16, %v380_v15 }
 0x17b   :  { %v383_v18 = vrot.slane %v382_v17, 2 }
 0x17d   :  { %v384_v19 = vadd.f32 %v383_v18, %v382_v17 }
 0x17f   :  { %v385_v21 = vrot.slane %v384_v19, 1 }
 0x181   :  { %v386_v23 = vadd.f32 %v385_v21, %v384_v19 }
 0x183   :  { %v394_v24 = vadd.f32 %v393_v22, %v386_v23 }
 0x185   :  { %v479_v25 = vmul.f32 -1.442695, %v394_v24 }
 0x187   :  { %501 = vpow2.f32 %v479_v25 }
 0x18d   :  { %v502_v26 = vpop.eup %501 }
 0x18e   :  { %v398_v27 = vadd.f32 1.0, %v502_v26 }
 0x190   :  { %503 = vrcp.f32 %v398_v27  ;;  %v410_v31 = vand.u32 2147483648, %v398_v27  ;;  %v408_v33 = vand.u32 2147483647, %v398_v27  ;;  %vm404_vm3 = vweird.f32 %v398_v27 }
 0x192   :  { %v411_v35 = vor.u32 1.1754944e-38, %v410_v31  ;;  %vm409_vm5 = vcmp.eq.f32.partialorder %v408_v33, 8.507059e+37 }
 0x196   :  { %v504_v28 = vpop.eup %503 }
 0x197   :  { %v400_v29 = vmul.f32 %v504_v28, %v398_v27  ;;  %vm405_vm2 = vweird.f32 %v504_v28 }
 0x198   :  { %vm406_vm4 = vmor %vm404_vm3, %vm405_vm2 }
 0x199   :  { %v401_v30 = vsub.f32 1.0, %v400_v29 }
 0x19b   :  { %v402_v32 = vmul.f32 %v504_v28, %v401_v30 }
 0x19d   :  { %v403_v34 = vadd.f32 %v504_v28, %v402_v32 }
 0x19f   :  { %v407_v36 = vsel %vm406_vm4, %v504_v28, %v403_v34 }
 0x1a0   :  { %v412_v37 = vsel %vm409_vm5, %v411_v35, %v407_v36 }
 0x1a1   :  { %414 = vst [vmem:[#allocation3] sm:$0x1] %v412_v37 }
 0x1a2   :  { %425 = dma.vmem_to_hbm [thread:$0]  %s421_s15, 16, %s423_s17, [#allocation4]  }
 0x1a3   :  { %529 = dma.done.wait [#allocation4], 16  }
 0x1a4   :  { %530 = vsyncadd [#allocation4], 4294967280 }
 0x1a5   :  { %430 = vsyncpa [#allocation4], 1 }

</bundles_post_ra>
